<compile_context>
chip_gen: v5e
topology: v5e:2x2
jax: 0.10.0
libtpu: 0.0.40
codegen_flags: <defaults>
</compile_context>

<pallas_src>
import math

import jax
import jax.numpy as jnp
from jax import lax
from jax.experimental import pallas as pl
from jax.experimental.pallas import tpu as pltpu


def _layer_norm_f32(x, gamma, beta, eps=1e-5):
    xf = x.astype(jnp.float32)
    mean = jnp.mean(xf, axis=-1, keepdims=True)
    var = jnp.mean(jnp.square(xf - mean), axis=-1, keepdims=True)
    return ((xf - mean) * lax.rsqrt(var + eps) * gamma.astype(jnp.float32)
            + beta.astype(jnp.float32))


# ---------------------------------------------------------------------------
# Kernel 1: pre-norm causal multi-head self-attention + residual
# grid = (B, num_q_tiles, num_heads); the head axis accumulates into scratch.
# ---------------------------------------------------------------------------
def _attn_block_kernel(
    x_ref,                    # (S, D)    full sequence for this batch element
    ln1g_ref, ln1b_ref,       # (1, D)
    wq_ref, bq_ref,           # (D, hd), (1, hd)   this head
    wk_ref, bk_ref,
    wv_ref, bv_ref,
    wo_ref,                   # (hd, D)            this head
    bo_ref,                   # (1, D)
    out_ref,                  # (TQ, D)
    xn_ref,                   # VMEM (S, D) f32    LayerNorm1(x) cache (per batch)
    k_ref, v_ref,             # VMEM (H, S, hd)    K / V cache (per batch)
    bias_ref,                 # VMEM (TQ, S) f32   causal additive bias (per q-tile)
    acc_ref,                  # VMEM (TQ, D) f32   sum over heads of o_h @ Wo_h
):
    qi = pl.program_id(1)
    h = pl.program_id(2)
    num_heads = pl.num_programs(2)
    S, D = x_ref.shape
    TQ = out_ref.shape[0]
    hd = wq_ref.shape[1]
    scale = 1.0 / math.sqrt(hd)
    cdt = wq_ref.dtype                          # dtype fed to the MXU

    q_start = pl.multiple_of(qi * TQ, TQ)

    # -- once per (batch, q-tile): zero head accumulator, build causal bias ----
    @pl.when(h == 0)
    def _():
        acc_ref[...] = jnp.zeros_like(acc_ref)
        row = q_start + lax.broadcasted_iota(jnp.int32, (TQ, S), 0)
        col = lax.broadcasted_iota(jnp.int32, (TQ, S), 1)
        bias_ref[...] = jnp.where(row >= col, 0.0, -1e30).astype(jnp.float32)

    # -- once per batch element: LayerNorm of the full sequence ---------------
    @pl.when((h == 0) & (qi == 0))
    def _():
        xn_ref[...] = _layer_norm_f32(x_ref[...], ln1g_ref[...], ln1b_ref[...])

    # -- once per (batch, head): K_h / V_h over the full sequence -------------
    #    (reused by all query tiles of this batch element)
    @pl.when(qi == 0)
    def _():
        xn_c = xn_ref[...].astype(cdt)
        k_ref[h] = (jnp.dot(xn_c, wk_ref[...], preferred_element_type=jnp.float32)
                    + bk_ref[...]).astype(k_ref.dtype)
        v_ref[h] = (jnp.dot(xn_c, wv_ref[...], preferred_element_type=jnp.float32)
                    + bv_ref[...]).astype(v_ref.dtype)

    # -- per (batch, q-tile, head): attention ----------------------------------
    xn_q = xn_ref[pl.ds(q_start, TQ), :].astype(cdt)
    # 1/sqrt(hd) folded into q (saves an (TQ, S) multiply on the score matrix)
    q = (jnp.dot(xn_q, wq_ref[...], preferred_element_type=jnp.float32)
         + bq_ref[...]) * scale                                    # (TQ, hd) f32
    k = k_ref[h]                                                   # (S, hd)
    v = v_ref[h]                                                   # (S, hd)

    s = lax.dot_general(q.astype(cdt), k, (((1,), (1,)), ((), ())),
                        preferred_element_type=jnp.float32)        # (TQ, S)
    s = s + bias_ref[...]
    m = jnp.max(s, axis=-1, keepdims=True)
    p = jnp.exp(s - m)
    l = jnp.sum(p, axis=-1, keepdims=True)
    p = p * pl.reciprocal(l)            # EUP reciprocal + mul instead of a divide
    o = jnp.dot(p.astype(v.dtype), v, preferred_element_type=jnp.float32)  # (TQ, hd)
    acc_ref[...] += jnp.dot(o.astype(cdt), wo_ref[...],
                            preferred_element_type=jnp.float32)    # (TQ, D)

    # -- last head: output-projection bias + residual, write the tile ---------
    @pl.when(h == num_heads - 1)
    def _():
        x_q = x_ref[pl.ds(q_start, TQ), :].astype(jnp.float32)
        out_ref[...] = (x_q + acc_ref[...] + bo_ref[...]).astype(out_ref.dtype)


# ---------------------------------------------------------------------------
# Kernel 2: pre-norm feed-forward (Linear -> ReLU -> Linear) + residual
# grid = (B, num_q_tiles, num_ff_chunks); the d_ff axis accumulates into scratch.
# ---------------------------------------------------------------------------
def _ffn_block_kernel(
    y_ref,                    # (TQ, D)   attention-block output tile
    ln2g_ref, ln2b_ref,       # (1, D)
    w1_ref, b1_ref,           # (D, TF), (1, TF)   d_ff chunk
    w2_ref,                   # (TF, D)
    b2_ref,                   # (1, D)
    out_ref,                  # (TQ, D)
    xn_ref,                   # VMEM (TQ, D) f32   LayerNorm2(y) cache
    acc_ref,                  # VMEM (TQ, D) f32   partial FFN output
):
    f = pl.program_id(2)
    cdt = w1_ref.dtype

    @pl.when(f == 0)
    def _():
        xn_ref[...] = _layer_norm_f32(y_ref[...], ln2g_ref[...], ln2b_ref[...])
        acc_ref[...] = jnp.zeros_like(acc_ref)

    h1 = (jnp.dot(xn_ref[...].astype(cdt), w1_ref[...],
                  preferred_element_type=jnp.float32) + b1_ref[...])   # (TQ, TF)
    h1 = jnp.maximum(h1, 0.0)
    acc_ref[...] += jnp.dot(h1.astype(cdt), w2_ref[...],
                            preferred_element_type=jnp.float32)        # (TQ, D)

    @pl.when(f == pl.num_programs(2) - 1)
    def _():
        out_ref[...] = (y_ref[...].astype(jnp.float32) + acc_ref[...]
                        + b2_ref[...]).astype(out_ref.dtype)


# ---------------------------------------------------------------------------
# Wrapper
# ---------------------------------------------------------------------------
def decoder_block(x, params, num_heads, *, q_tile=None, ff_tile=None):
    B, S, D = x.shape
    assert D % num_heads == 0, "d_model must be divisible by num_heads"
    hd = D // num_heads
    d_ff = params["w1"].shape[1]
    itemsize = x.dtype.itemsize

    # Tile sizes (collapse to full extents at small shapes so the (8,128)
    # block constraint is satisfied either by divisibility or full-dim blocks).
    TQ = q_tile if q_tile is not None else min(S, 256)
    TF = ff_tile if ff_tile is not None else min(d_ff, 1024)
    assert S % TQ == 0, "seq_len must be divisible by the query tile"
    assert d_ff % TF == 0, "4*d_model must be divisible by the ffn tile"
    n_q = S // TQ
    n_f = d_ff // TF

    # --- split fused projection weights per head (host side, once) -----------
    wq3 = params["wq"].reshape(D, num_heads, hd).transpose(1, 0, 2)   # (H, D, hd)
    wk3 = params["wk"].reshape(D, num_heads, hd).transpose(1, 0, 2)
    wv3 = params["wv"].reshape(D, num_heads, hd).transpose(1, 0, 2)
    bq3 = params["bq"].reshape(num_heads, 1, hd)                      # (H, 1, hd)
    bk3 = params["bk"].reshape(num_heads, 1, hd)
    bv3 = params["bv"].reshape(num_heads, 1, hd)
    wo3 = params["wo"].reshape(num_heads, hd, D)                      # (H, hd, D)

    # ----------------------- kernel 1: x + MHA(LN1(x)) -----------------------
    def _const2(b, q, h):
        return (0, 0)

    def _per_head(b, q, h):
        return (h, 0, 0)

    attn_in_specs = [
        pl.BlockSpec((None, S, D), lambda b, q, h: (b, 0, 0)),   # x (full sequence)
        pl.BlockSpec((1, D), _const2),                           # ln1_g
        pl.BlockSpec((1, D), _const2),                           # ln1_b
        pl.BlockSpec((None, D, hd), _per_head),                  # wq[h]
        pl.BlockSpec((None, 1, hd), _per_head),                  # bq[h]
        pl.BlockSpec((None, D, hd), _per_head),                  # wk[h]
        pl.BlockSpec((None, 1, hd), _per_head),                  # bk[h]
        pl.BlockSpec((None, D, hd), _per_head),                  # wv[h]
        pl.BlockSpec((None, 1, hd), _per_head),                  # bv[h]
        pl.BlockSpec((None, hd, D), _per_head),                  # wo[h]
        pl.BlockSpec((1, D), _const2),                           # bo
    ]

    attn_scratch_bytes = (4 * (S * D + TQ * S + TQ * D)
                          + 2 * num_heads * S * hd * itemsize)
    attn_block_bytes = itemsize * (S * D + TQ * D + 4 * D * hd + 3 * hd + 3 * D)
    attn_vmem_limit = int(min(max(attn_scratch_bytes + 2 * attn_block_bytes + (8 << 20),
                                  32 << 20), 48 << 20))

    y = pl.pallas_call(
        _attn_block_kernel,
        out_shape=jax.ShapeDtypeStruct((B, S, D), x.dtype),
        grid=(B, n_q, num_heads),
        in_specs=attn_in_specs,
        out_specs=pl.BlockSpec((None, TQ, D), lambda b, q, h: (b, q, 0)),
        scratch_shapes=[
            pltpu.VMEM((S, D), jnp.float32),                 # LN1(x) cache
            pltpu.VMEM((num_heads, S, hd), x.dtype),         # K cache
            pltpu.VMEM((num_heads, S, hd), x.dtype),         # V cache
            pltpu.VMEM((TQ, S), jnp.float32),                # causal bias
            pltpu.VMEM((TQ, D), jnp.float32),                # head accumulator
        ],
        compiler_params=pltpu.CompilerParams(
            # batch axis is megacore-parallel; q-tile / head axes carry scratch
            # state (LN & K/V caches, accumulator) so they stay "arbitrary".
            dimension_semantics=("parallel", "arbitrary", "arbitrary"),
            vmem_limit_bytes=attn_vmem_limit,
        ),
        cost_estimate=pl.CostEstimate(
            flops=int(8 * B * S * D * D + 4 * B * S * S * D),
            transcendentals=int(B * num_heads * S * S),
            bytes_accessed=int(itemsize * (2 * B * S * D + 4 * D * D + 6 * D)),
        ),
    )(x, params["ln1_g"], params["ln1_b"],
      wq3, bq3, wk3, bk3, wv3, bv3, wo3, params["bo"])

    # ----------------------- kernel 2: y + FFN(LN2(y)) -----------------------
    ffn_in_specs = [
        pl.BlockSpec((None, TQ, D), lambda b, q, f: (b, q, 0)),  # y tile
        pl.BlockSpec((1, D), lambda b, q, f: (0, 0)),            # ln2_g
        pl.BlockSpec((1, D), lambda b, q, f: (0, 0)),            # ln2_b
        pl.BlockSpec((D, TF), lambda b, q, f: (0, f)),           # w1 chunk
        pl.BlockSpec((1, TF), lambda b, q, f: (0, f)),           # b1 chunk
        pl.BlockSpec((TF, D), lambda b, q, f: (f, 0)),           # w2 chunk
        pl.BlockSpec((1, D), lambda b, q, f: (0, 0)),            # b2
    ]

    ffn_scratch_bytes = 2 * TQ * D * 4
    ffn_block_bytes = itemsize * (2 * TQ * D + D * TF + TF + TF * D + 3 * D)
    ffn_vmem_limit = int(min(max(ffn_scratch_bytes + 2 * ffn_block_bytes + (8 << 20),
                                 32 << 20), 48 << 20))

    out = pl.pallas_call(
        _ffn_block_kernel,
        out_shape=jax.ShapeDtypeStruct((B, S, D), x.dtype),
        grid=(B, n_q, n_f),
        in_specs=ffn_in_specs,
        out_specs=pl.BlockSpec((None, TQ, D), lambda b, q, f: (b, q, 0)),
        scratch_shapes=[
            pltpu.VMEM((TQ, D), jnp.float32),                # LN2(y) cache
            pltpu.VMEM((TQ, D), jnp.float32),                # FFN accumulator
        ],
        compiler_params=pltpu.CompilerParams(
            dimension_semantics=("parallel", "parallel", "arbitrary"),
            vmem_limit_bytes=ffn_vmem_limit,
        ),
        cost_estimate=pl.CostEstimate(
            flops=int(4 * B * S * D * d_ff),
            transcendentals=0,
            bytes_accessed=int(itemsize * (2 * B * S * D + 2 * D * d_ff + d_ff + 2 * D)),
        ),
    )(y, params["ln2_g"], params["ln2_b"],
      params["w1"], params["b1"], params["w2"], params["b2"])
    return out


# ----------------------------- reference (pure JAX) -----------------------------
def decoder_block_ref(x, params, num_heads):
    B, S, D = x.shape
    hd = D // num_heads

    def ln(v, g, b):
        m = jnp.mean(v, axis=-1, keepdims=True)
        var = jnp.mean((v - m) ** 2, axis=-1, keepdims=True)
        return (v - m) / jnp.sqrt(var + 1e-5) * g + b

    xn = ln(x, params["ln1_g"][0], params["ln1_b"][0])
    q = xn @ params["wq"] + params["bq"][0]
    k = xn @ params["wk"] + params["bk"][0]
    v = xn @ params["wv"] + params["bv"][0]

    def split(t):
        return t.reshape(B, S, num_heads, hd).transpose(0, 2, 1, 3)

    qh, kh, vh = split(q), split(k), split(v)
    s = jnp.einsum("bhqd,bhkd->bhqk", qh, kh) / jnp.sqrt(hd)
    mask = jnp.tril(jnp.ones((S, S), dtype=bool))
    s = jnp.where(mask, s, -1e30)
    p = jax.nn.softmax(s, axis=-1)
    o = jnp.einsum("bhqk,bhkd->bhqd", p, vh).transpose(0, 2, 1, 3).reshape(B, S, D)
    attn = o @ params["wo"] + params["bo"][0]
    x = x + attn

    xn2 = ln(x, params["ln2_g"][0], params["ln2_b"][0])
    h1 = jnp.maximum(xn2 @ params["w1"] + params["b1"][0], 0.0)
    ff = h1 @ params["w2"] + params["b2"][0]
    return x + ff


def make_params(key, d_model):
    d_ff = 4 * d_model
    ks = jax.random.split(key, 8)
    init = lambda k, shape, fan_in: (jax.random.normal(k, shape, jnp.float32)
                                     / jnp.sqrt(fan_in))
    return {
        "ln1_g": jnp.ones((1, d_model), jnp.float32),
        "ln1_b": jnp.zeros((1, d_model), jnp.float32),
        "wq": init(ks[0], (d_model, d_model), d_model),
        "bq": jnp.zeros((1, d_model), jnp.float32),
        "wk": init(ks[1], (d_model, d_model), d_model),
        "bk": jnp.zeros((1, d_model), jnp.float32),
        "wv": init(ks[2], (d_model, d_model), d_model),
        "bv": jnp.zeros((1, d_model), jnp.float32),
        "wo": init(ks[3], (d_model, d_model), d_model),
        "bo": jnp.zeros((1, d_model), jnp.float32),
        "ln2_g": jnp.ones((1, d_model), jnp.float32),
        "ln2_b": jnp.zeros((1, d_model), jnp.float32),
        "w1": init(ks[4], (d_model, d_ff), d_model),
        "b1": jnp.zeros((1, d_ff), jnp.float32),
        "w2": init(ks[5], (d_ff, d_model), d_ff),
        "b2": jnp.zeros((1, d_model), jnp.float32),
    }


if __name__ == "__main__":
    batch, seq_len, d_model, num_heads = 2, 8, 32, 4

    key = jax.random.PRNGKey(0)
    k_x, k_p = jax.random.split(key)
    x = jax.random.normal(k_x, (batch, seq_len, d_model), jnp.float32)
    params = make_params(k_p, d_model)

    out = decoder_block(x, params, num_heads)
    out = jax.block_until_ready(out)

    ref = decoder_block_ref(x, params, num_heads)
    assert out.shape == (batch, seq_len, d_model)
    assert jnp.allclose(out, ref, atol=1e-4, rtol=1e-4), "mismatch vs pure-JAX reference"

    print("KERNEL_OK")
</pallas_src>

<mosaic_0001>
module attributes {stable_mosaic.version = 11 : i64} {
  func.func @_attn_block_kernel(%arg0: i32, %arg1: i32, %arg2: i32, %arg3: memref<1x8x32xf32, #tpu.memory_space<vmem>>, %arg4: memref<1x32xf32, #tpu.memory_space<vmem>>, %arg5: memref<1x32xf32, #tpu.memory_space<vmem>>, %arg6: memref<1x32x8xf32, #tpu.memory_space<vmem>>, %arg7: memref<1x1x8xf32, #tpu.memory_space<vmem>>, %arg8: memref<1x32x8xf32, #tpu.memory_space<vmem>>, %arg9: memref<1x1x8xf32, #tpu.memory_space<vmem>>, %arg10: memref<1x32x8xf32, #tpu.memory_space<vmem>>, %arg11: memref<1x1x8xf32, #tpu.memory_space<vmem>>, %arg12: memref<1x8x32xf32, #tpu.memory_space<vmem>>, %arg13: memref<1x32xf32, #tpu.memory_space<vmem>>, %arg14: memref<1x8x32xf32, #tpu.memory_space<vmem>>, %arg15: memref<8x32xf32, #tpu.memory_space<vmem>>, %arg16: memref<4x8x8xf32, #tpu.memory_space<vmem>>, %arg17: memref<4x8x8xf32, #tpu.memory_space<vmem>>, %arg18: memref<8x8xf32, #tpu.memory_space<vmem>>, %arg19: memref<8x32xf32, #tpu.memory_space<vmem>>) attributes {dimension_semantics = [#tpu.dimension_semantics<parallel>, #tpu.dimension_semantics<arbitrary>, #tpu.dimension_semantics<arbitrary>], iteration_bounds = array<i64: 2, 1, 4>, scalar_prefetch = 0 : i64, scratch_operands = 5 : i64, tpu.core_type = #tpu.core_type<tc>, window_params = [{transform_indices = @transform_0, window_bounds = array<i64: 1, 8, 32>}, {pipeline_mode = #tpu.pipeline_mode<synchronous>, transform_indices = @transform_1, window_bounds = array<i64: 1, 32>}, {pipeline_mode = #tpu.pipeline_mode<synchronous>, transform_indices = @transform_2, window_bounds = array<i64: 1, 32>}, {transform_indices = @transform_3, window_bounds = array<i64: 1, 32, 8>}, {transform_indices = @transform_4, window_bounds = array<i64: 1, 1, 8>}, {transform_indices = @transform_5, window_bounds = array<i64: 1, 32, 8>}, {transform_indices = @transform_6, window_bounds = array<i64: 1, 1, 8>}, {transform_indices = @transform_7, window_bounds = array<i64: 1, 32, 8>}, {transform_indices = @transform_8, window_bounds = array<i64: 1, 1, 8>}, {transform_indices = @transform_9, window_bounds = array<i64: 1, 8, 32>}, {pipeline_mode = #tpu.pipeline_mode<synchronous>, transform_indices = @transform_10, window_bounds = array<i64: 1, 32>}, {transform_indices = @transform_11, window_bounds = array<i64: 1, 8, 32>}]} {
    %c8_i32 = arith.constant 8 : i32
    %0 = arith.muli %arg1, %c8_i32 : i32
    %1 = tpu.assume_multiple %0, 8 : i32
    %c0_i32 = arith.constant 0 : i32
    %2 = arith.cmpi eq, %arg2, %c0_i32 : i32
    %3 = arith.extui %2 : i1 to i32
    %c0_i32_0 = arith.constant 0 : i32
    %4 = arith.cmpi ne, %3, %c0_i32_0 : i32
    scf.if %4 {
      %cst_32 = arith.constant 0.000000e+00 : f32
      %53 = vector.broadcast %cst_32 : f32 to vector<8x32xf32>
      %c0_33 = arith.constant 0 : index
      %c0_34 = arith.constant 0 : index
      %54 = vector.load %arg19[%c0_33, %c0_34] : memref<8x32xf32, #tpu.memory_space<vmem>>, vector<8x32xf32>
      tpu.vector_store %arg19[%c0_33, %c0_34], %53 {strides = array<i32>} : memref<8x32xf32, #tpu.memory_space<vmem>>, vector<8x32xf32>,
      %55 = tpu.iota {dimensions = array<i32: 0>} : vector<8x8xi32>
      %56 = vector.broadcast %1 : i32 to vector<8x8xi32>
      %57 = arith.addi %56, %55 : vector<8x8xi32>
      %58 = tpu.iota {dimensions = array<i32: 1>} : vector<8x8xi32>
      %59 = arith.cmpi sge, %57, %58 : vector<8x8xi32>
      %cst_35 = arith.constant 0.000000e+00 : f32
      %cst_36 = arith.constant -1.000000e+30 : f32
      %60 = vector.broadcast %cst_35 : f32 to vector<8x8xf32>
      %61 = vector.broadcast %cst_36 : f32 to vector<8x8xf32>
      %62 = arith.select %59, %60, %61 : vector<8x8xi1>, vector<8x8xf32>
      %c0_37 = arith.constant 0 : index
      %c0_38 = arith.constant 0 : index
      %63 = vector.load %arg18[%c0_37, %c0_38] : memref<8x8xf32, #tpu.memory_space<vmem>>, vector<8x8xf32>
      tpu.vector_store %arg18[%c0_37, %c0_38], %62 {strides = array<i32>} : memref<8x8xf32, #tpu.memory_space<vmem>>, vector<8x8xf32>,
    } else {
    }
    %c0_i32_1 = arith.constant 0 : i32
    %5 = arith.cmpi eq, %arg2, %c0_i32_1 : i32
    %c0_i32_2 = arith.constant 0 : i32
    %6 = arith.cmpi eq, %arg1, %c0_i32_2 : i32
    %7 = arith.andi %5, %6 : i1
    %8 = arith.extui %7 : i1 to i32
    %c0_i32_3 = arith.constant 0 : i32
    %9 = arith.cmpi ne, %8, %c0_i32_3 : i32
    scf.if %9 {
      %c0_32 = arith.constant 0 : index
      %c0_33 = arith.constant 0 : index
      %c0_34 = arith.constant 0 : index
      %53 = vector.load %arg3[%c0_32, %c0_33, %c0_34] : memref<1x8x32xf32, #tpu.memory_space<vmem>>, vector<1x8x32xf32>
      %54 = vector.shape_cast %53 : vector<1x8x32xf32> to vector<8x32xf32>
      %c0_35 = arith.constant 0 : index
      %c0_36 = arith.constant 0 : index
      %55 = vector.load %arg4[%c0_35, %c0_36] : memref<1x32xf32, #tpu.memory_space<vmem>>, vector<1x32xf32>
      %c0_37 = arith.constant 0 : index
      %c0_38 = arith.constant 0 : index
      %56 = vector.load %arg5[%c0_37, %c0_38] : memref<1x32xf32, #tpu.memory_space<vmem>>, vector<1x32xf32>
      %cst_39 = arith.constant dense<0.000000e+00> : vector<8xf32>
      %57 = vector.multi_reduction <add>, %54, %cst_39 [1] : vector<8x32xf32> to vector<8xf32>
      %58 = vector.shape_cast %57 : vector<8xf32> to vector<8x1xf32>
      %cst_40 = arith.constant 3.200000e+01 : f32
      %59 = vector.broadcast %cst_40 : f32 to vector<8x1xf32>
      %60 = arith.divf %58, %59 : vector<8x1xf32>
      %61 = vector.broadcast %60 : vector<8x1xf32> to vector<8x32xf32>
      %62 = arith.subf %54, %61 : vector<8x32xf32>
      %63 = arith.mulf %62, %62 : vector<8x32xf32>
      %cst_41 = arith.constant dense<0.000000e+00> : vector<8xf32>
      %64 = vector.multi_reduction <add>, %63, %cst_41 [1] : vector<8x32xf32> to vector<8xf32>
      %65 = vector.shape_cast %64 : vector<8xf32> to vector<8x1xf32>
      %cst_42 = arith.constant 3.200000e+01 : f32
      %66 = vector.broadcast %cst_42 : f32 to vector<8x1xf32>
      %67 = arith.divf %65, %66 : vector<8x1xf32>
      %68 = vector.broadcast %60 : vector<8x1xf32> to vector<8x32xf32>
      %69 = arith.subf %54, %68 : vector<8x32xf32>
      %cst_43 = arith.constant 9.99999974E-6 : f32
      %70 = vector.broadcast %cst_43 : f32 to vector<8x1xf32>
      %71 = arith.addf %67, %70 : vector<8x1xf32>
      %72 = math.rsqrt %71 : vector<8x1xf32>
      %73 = vector.broadcast %72 : vector<8x1xf32> to vector<8x32xf32>
      %74 = arith.mulf %69, %73 : vector<8x32xf32>
      %75 = vector.broadcast %55 : vector<1x32xf32> to vector<8x32xf32>
      %76 = arith.mulf %74, %75 : vector<8x32xf32>
      %77 = vector.broadcast %56 : vector<1x32xf32> to vector<8x32xf32>
      %78 = arith.addf %76, %77 : vector<8x32xf32>
      %c0_44 = arith.constant 0 : index
      %c0_45 = arith.constant 0 : index
      %79 = vector.load %arg15[%c0_44, %c0_45] : memref<8x32xf32, #tpu.memory_space<vmem>>, vector<8x32xf32>
      tpu.vector_store %arg15[%c0_44, %c0_45], %78 {strides = array<i32>} : memref<8x32xf32, #tpu.memory_space<vmem>>, vector<8x32xf32>,
    } else {
    }
    %c0_i32_4 = arith.constant 0 : i32
    %10 = arith.cmpi eq, %arg1, %c0_i32_4 : i32
    %11 = arith.extui %10 : i1 to i32
    %c0_i32_5 = arith.constant 0 : i32
    %12 = arith.cmpi ne, %11, %c0_i32_5 : i32
    scf.if %12 {
      %c0_32 = arith.constant 0 : index
      %c0_33 = arith.constant 0 : index
      %53 = vector.load %arg15[%c0_32, %c0_33] : memref<8x32xf32, #tpu.memory_space<vmem>>, vector<8x32xf32>
      %c0_34 = arith.constant 0 : index
      %c0_35 = arith.constant 0 : index
      %c0_36 = arith.constant 0 : index
      %54 = vector.load %arg8[%c0_34, %c0_35, %c0_36] : memref<1x32x8xf32, #tpu.memory_space<vmem>>, vector<1x32x8xf32>
      %55 = vector.shape_cast %54 : vector<1x32x8xf32> to vector<32x8xf32>
      %cst_37 = arith.constant dense<0.000000e+00> : vector<8x8xf32>
      %56 = tpu.matmul %53, %55, %cst_37 {dimension_numbers = #tpu.dot_dimension_numbers<[1], [0], [0], [1], [0, 0, 1, 1], [], []>} : vector<8x32xf32>, vector<32x8xf32>, vector<8x8xf32> -> vector<8x8xf32>
      %c0_38 = arith.constant 0 : index
      %c0_39 = arith.constant 0 : index
      %c0_40 = arith.constant 0 : index
      %57 = vector.load %arg9[%c0_38, %c0_39, %c0_40] : memref<1x1x8xf32, #tpu.memory_space<vmem>>, vector<1x1x8xf32>
      %58 = vector.shape_cast %57 : vector<1x1x8xf32> to vector<1x8xf32>
      %59 = vector.broadcast %58 : vector<1x8xf32> to vector<8x8xf32>
      %60 = arith.addf %56, %59 : vector<8x8xf32>
      %61 = arith.index_cast %arg2 : i32 to index
      %c0_41 = arith.constant 0 : index
      %c0_42 = arith.constant 0 : index
      %62 = vector.load %arg16[%61, %c0_41, %c0_42] : memref<4x8x8xf32, #tpu.memory_space<vmem>>, vector<1x8x8xf32>
      %63 = vector.shape_cast %62 : vector<1x8x8xf32> to vector<8x8xf32>
      %64 = vector.shape_cast %60 : vector<8x8xf32> to vector<1x8x8xf32>
      tpu.vector_store %arg16[%61, %c0_41, %c0_42], %64 {strides = array<i32>} : memref<4x8x8xf32, #tpu.memory_space<vmem>>, vector<1x8x8xf32>,
      %c0_43 = arith.constant 0 : index
      %c0_44 = arith.constant 0 : index
      %c0_45 = arith.constant 0 : index
      %65 = vector.load %arg10[%c0_43, %c0_44, %c0_45] : memref<1x32x8xf32, #tpu.memory_space<vmem>>, vector<1x32x8xf32>
      %66 = vector.shape_cast %65 : vector<1x32x8xf32> to vector<32x8xf32>
      %cst_46 = arith.constant dense<0.000000e+00> : vector<8x8xf32>
      %67 = tpu.matmul %53, %66, %cst_46 {dimension_numbers = #tpu.dot_dimension_numbers<[1], [0], [0], [1], [0, 0, 1, 1], [], []>} : vector<8x32xf32>, vector<32x8xf32>, vector<8x8xf32> -> vector<8x8xf32>
      %c0_47 = arith.constant 0 : index
      %c0_48 = arith.constant 0 : index
      %c0_49 = arith.constant 0 : index
      %68 = vector.load %arg11[%c0_47, %c0_48, %c0_49] : memref<1x1x8xf32, #tpu.memory_space<vmem>>, vector<1x1x8xf32>
      %69 = vector.shape_cast %68 : vector<1x1x8xf32> to vector<1x8xf32>
      %70 = vector.broadcast %69 : vector<1x8xf32> to vector<8x8xf32>
      %71 = arith.addf %67, %70 : vector<8x8xf32>
      %72 = arith.index_cast %arg2 : i32 to index
      %c0_50 = arith.constant 0 : index
      %c0_51 = arith.constant 0 : index
      %73 = vector.load %arg17[%72, %c0_50, %c0_51] : memref<4x8x8xf32, #tpu.memory_space<vmem>>, vector<1x8x8xf32>
      %74 = vector.shape_cast %73 : vector<1x8x8xf32> to vector<8x8xf32>
      %75 = vector.shape_cast %71 : vector<8x8xf32> to vector<1x8x8xf32>
      tpu.vector_store %arg17[%72, %c0_50, %c0_51], %75 {strides = array<i32>} : memref<4x8x8xf32, #tpu.memory_space<vmem>>, vector<1x8x8xf32>,
    } else {
    }
    %13 = arith.index_cast %1 : i32 to index
    %c0 = arith.constant 0 : index
    %14 = vector.load %arg15[%13, %c0] : memref<8x32xf32, #tpu.memory_space<vmem>>, vector<8x32xf32>
    %c0_6 = arith.constant 0 : index
    %c0_7 = arith.constant 0 : index
    %c0_8 = arith.constant 0 : index
    %15 = vector.load %arg6[%c0_6, %c0_7, %c0_8] : memref<1x32x8xf32, #tpu.memory_space<vmem>>, vector<1x32x8xf32>
    %16 = vector.shape_cast %15 : vector<1x32x8xf32> to vector<32x8xf32>
    %cst = arith.constant dense<0.000000e+00> : vector<8x8xf32>
    %17 = tpu.matmul %14, %16, %cst {dimension_numbers = #tpu.dot_dimension_numbers<[1], [0], [0], [1], [0, 0, 1, 1], [], []>} : vector<8x32xf32>, vector<32x8xf32>, vector<8x8xf32> -> vector<8x8xf32>
    %c0_9 = arith.constant 0 : index
    %c0_10 = arith.constant 0 : index
    %c0_11 = arith.constant 0 : index
    %18 = vector.load %arg7[%c0_9, %c0_10, %c0_11] : memref<1x1x8xf32, #tpu.memory_space<vmem>>, vector<1x1x8xf32>
    %19 = vector.shape_cast %18 : vector<1x1x8xf32> to vector<1x8xf32>
    %20 = vector.broadcast %19 : vector<1x8xf32> to vector<8x8xf32>
    %21 = arith.addf %17, %20 : vector<8x8xf32>
    %cst_12 = arith.constant 0.353553385 : f32
    %22 = vector.broadcast %cst_12 : f32 to vector<8x8xf32>
    %23 = arith.mulf %21, %22 : vector<8x8xf32>
    %24 = arith.index_cast %arg2 : i32 to index
    %c0_13 = arith.constant 0 : index
    %c0_14 = arith.constant 0 : index
    %25 = vector.load %arg16[%24, %c0_13, %c0_14] : memref<4x8x8xf32, #tpu.memory_space<vmem>>, vector<1x8x8xf32>
    %26 = vector.shape_cast %25 : vector<1x8x8xf32> to vector<8x8xf32>
    %27 = arith.index_cast %arg2 : i32 to index
    %c0_15 = arith.constant 0 : index
    %c0_16 = arith.constant 0 : index
    %28 = vector.load %arg17[%27, %c0_15, %c0_16] : memref<4x8x8xf32, #tpu.memory_space<vmem>>, vector<1x8x8xf32>
    %29 = vector.shape_cast %28 : vector<1x8x8xf32> to vector<8x8xf32>
    %cst_17 = arith.constant dense<0.000000e+00> : vector<8x8xf32>
    %30 = tpu.matmul %23, %26, %cst_17 {dimension_numbers = #tpu.dot_dimension_numbers<[1], [1], [0], [0], [0, 0, 1, 0], [], []>} : vector<8x8xf32>, vector<8x8xf32>, vector<8x8xf32> -> vector<8x8xf32>
    %c0_18 = arith.constant 0 : index
    %c0_19 = arith.constant 0 : index
    %31 = vector.load %arg18[%c0_18, %c0_19] : memref<8x8xf32, #tpu.memory_space<vmem>>, vector<8x8xf32>
    %32 = arith.addf %30, %31 : vector<8x8xf32>
    %cst_20 = arith.constant dense<0xFF800000> : vector<8xf32>
    %33 = vector.multi_reduction <maximumf>, %32, %cst_20 [1] : vector<8x8xf32> to vector<8xf32>
    %34 = vector.shape_cast %33 : vector<8xf32> to vector<8x1xf32>
    %35 = vector.broadcast %34 : vector<8x1xf32> to vector<8x8xf32>
    %36 = arith.subf %32, %35 : vector<8x8xf32>
    %37 = math.exp %36 : vector<8x8xf32>
    %cst_21 = arith.constant dense<0.000000e+00> : vector<8xf32>
    %38 = vector.multi_reduction <add>, %37, %cst_21 [1] : vector<8x8xf32> to vector<8xf32>
    %39 = vector.shape_cast %38 : vector<8xf32> to vector<8x1xf32>
    %40 = tpu.reciprocal %39 : vector<8x1xf32> -> vector<8x1xf32>
    %41 = vector.broadcast %40 : vector<8x1xf32> to vector<8x8xf32>
    %42 = arith.mulf %37, %41 : vector<8x8xf32>
    %cst_22 = arith.constant dense<0.000000e+00> : vector<8x8xf32>
    %43 = tpu.matmul %42, %29, %cst_22 {dimension_numbers = #tpu.dot_dimension_numbers<[1], [0], [0], [1], [0, 0, 1, 1], [], []>} : vector<8x8xf32>, vector<8x8xf32>, vector<8x8xf32> -> vector<8x8xf32>
    %c0_23 = arith.constant 0 : index
    %c0_24 = arith.constant 0 : index
    %44 = vector.load %arg19[%c0_23, %c0_24] : memref<8x32xf32, #tpu.memory_space<vmem>>, vector<8x32xf32>
    %c0_25 = arith.constant 0 : index
    %c0_26 = arith.constant 0 : index
    %c0_27 = arith.constant 0 : index
    %45 = vector.load %arg12[%c0_25, %c0_26, %c0_27] : memref<1x8x32xf32, #tpu.memory_space<vmem>>, vector<1x8x32xf32>
    %46 = vector.shape_cast %45 : vector<1x8x32xf32> to vector<8x32xf32>
    %cst_28 = arith.constant dense<0.000000e+00> : vector<8x32xf32>
    %47 = tpu.matmul %43, %46, %cst_28 {dimension_numbers = #tpu.dot_dimension_numbers<[1], [0], [0], [1], [0, 0, 1, 1], [], []>} : vector<8x8xf32>, vector<8x32xf32>, vector<8x32xf32> -> vector<8x32xf32>
    %48 = arith.addf %44, %47 : vector<8x32xf32>
    %c0_29 = arith.constant 0 : index
    %c0_30 = arith.constant 0 : index
    %49 = vector.load %arg19[%c0_29, %c0_30] : memref<8x32xf32, #tpu.memory_space<vmem>>, vector<8x32xf32>
    tpu.vector_store %arg19[%c0_29, %c0_30], %48 {strides = array<i32>} : memref<8x32xf32, #tpu.memory_space<vmem>>, vector<8x32xf32>,
    %c3_i32 = arith.constant 3 : i32
    %50 = arith.cmpi eq, %arg2, %c3_i32 : i32
    %51 = arith.extui %50 : i1 to i32
    %c0_i32_31 = arith.constant 0 : i32
    %52 = arith.cmpi ne, %51, %c0_i32_31 : i32
    scf.if %52 {
      %c0_32 = arith.constant 0 : index
      %53 = arith.index_cast %1 : i32 to index
      %c0_33 = arith.constant 0 : index
      %54 = vector.load %arg3[%c0_32, %53, %c0_33] : memref<1x8x32xf32, #tpu.memory_space<vmem>>, vector<1x8x32xf32>
      %55 = vector.shape_cast %54 : vector<1x8x32xf32> to vector<8x32xf32>
      %c0_34 = arith.constant 0 : index
      %c0_35 = arith.constant 0 : index
      %56 = vector.load %arg19[%c0_34, %c0_35] : memref<8x32xf32, #tpu.memory_space<vmem>>, vector<8x32xf32>
      %57 = arith.addf %55, %56 : vector<8x32xf32>
      %c0_36 = arith.constant 0 : index
      %c0_37 = arith.constant 0 : index
      %58 = vector.load %arg13[%c0_36, %c0_37] : memref<1x32xf32, #tpu.memory_space<vmem>>, vector<1x32xf32>
      %59 = vector.broadcast %58 : vector<1x32xf32> to vector<8x32xf32>
      %60 = arith.addf %57, %59 : vector<8x32xf32>
      %c0_38 = arith.constant 0 : index
      %c0_39 = arith.constant 0 : index
      %c0_40 = arith.constant 0 : index
      %61 = vector.load %arg14[%c0_38, %c0_39, %c0_40] : memref<1x8x32xf32, #tpu.memory_space<vmem>>, vector<1x8x32xf32>
      %62 = vector.shape_cast %61 : vector<1x8x32xf32> to vector<8x32xf32>
      %63 = vector.shape_cast %60 : vector<8x32xf32> to vector<1x8x32xf32>
      tpu.vector_store %arg14[%c0_38, %c0_39, %c0_40], %63 {strides = array<i32>} : memref<1x8x32xf32, #tpu.memory_space<vmem>>, vector<1x8x32xf32>,
    } else {
    }
    return
  }
  func.func @transform_0(%arg0: i32, %arg1: i32, %arg2: i32) -> (i32, i32, i32) {
    %c0_i32 = arith.constant 0 : i32
    %c0_i32_0 = arith.constant 0 : i32
    %c0_i32_1 = arith.constant 0 : i32
    return %arg0, %c0_i32, %c0_i32_0 : i32, i32, i32
  }
  func.func @transform_1(%arg0: i32, %arg1: i32, %arg2: i32) -> (i32, i32) {
    %c0_i32 = arith.constant 0 : i32
    %c0_i32_0 = arith.constant 0 : i32
    %c0_i32_1 = arith.constant 0 : i32
    return %c0_i32, %c0_i32_0 : i32, i32
  }
  func.func @transform_2(%arg0: i32, %arg1: i32, %arg2: i32) -> (i32, i32) {
    %c0_i32 = arith.constant 0 : i32
    %c0_i32_0 = arith.constant 0 : i32
    %c0_i32_1 = arith.constant 0 : i32
    return %c0_i32, %c0_i32_0 : i32, i32
  }
  func.func @transform_3(%arg0: i32, %arg1: i32, %arg2: i32) -> (i32, i32, i32) {
    %c0_i32 = arith.constant 0 : i32
    %c0_i32_0 = arith.constant 0 : i32
    %c0_i32_1 = arith.constant 0 : i32
    return %arg2, %c0_i32, %c0_i32_0 : i32, i32, i32
  }
  func.func @transform_4(%arg0: i32, %arg1: i32, %arg2: i32) -> (i32, i32, i32) {
    %c0_i32 = arith.constant 0 : i32
    %c0_i32_0 = arith.constant 0 : i32
    %c0_i32_1 = arith.constant 0 : i32
    return %arg2, %c0_i32, %c0_i32_0 : i32, i32, i32
  }
  func.func @transform_5(%arg0: i32, %arg1: i32, %arg2: i32) -> (i32, i32, i32) {
    %c0_i32 = arith.constant 0 : i32
    %c0_i32_0 = arith.constant 0 : i32
    %c0_i32_1 = arith.constant 0 : i32
    return %arg2, %c0_i32, %c0_i32_0 : i32, i32, i32
  }
  func.func @transform_6(%arg0: i32, %arg1: i32, %arg2: i32) -> (i32, i32, i32) {
    %c0_i32 = arith.constant 0 : i32
    %c0_i32_0 = arith.constant 0 : i32
    %c0_i32_1 = arith.constant 0 : i32
    return %arg2, %c0_i32, %c0_i32_0 : i32, i32, i32
  }
  func.func @transform_7(%arg0: i32, %arg1: i32, %arg2: i32) -> (i32, i32, i32) {
    %c0_i32 = arith.constant 0 : i32
    %c0_i32_0 = arith.constant 0 : i32
    %c0_i32_1 = arith.constant 0 : i32
    return %arg2, %c0_i32, %c0_i32_0 : i32, i32, i32
  }
  func.func @transform_8(%arg0: i32, %arg1: i32, %arg2: i32) -> (i32, i32, i32) {
    %c0_i32 = arith.constant 0 : i32
    %c0_i32_0 = arith.constant 0 : i32
    %c0_i32_1 = arith.constant 0 : i32
    return %arg2, %c0_i32, %c0_i32_0 : i32, i32, i32
  }
  func.func @transform_9(%arg0: i32, %arg1: i32, %arg2: i32) -> (i32, i32, i32) {
    %c0_i32 = arith.constant 0 : i32
    %c0_i32_0 = arith.constant 0 : i32
    %c0_i32_1 = arith.constant 0 : i32
    return %arg2, %c0_i32, %c0_i32_0 : i32, i32, i32
  }
  func.func @transform_10(%arg0: i32, %arg1: i32, %arg2: i32) -> (i32, i32) {
    %c0_i32 = arith.constant 0 : i32
    %c0_i32_0 = arith.constant 0 : i32
    %c0_i32_1 = arith.constant 0 : i32
    return %c0_i32, %c0_i32_0 : i32, i32
  }
  func.func @transform_11(%arg0: i32, %arg1: i32, %arg2: i32) -> (i32, i32, i32) {
    %c0_i32 = arith.constant 0 : i32
    %c0_i32_0 = arith.constant 0 : i32
    return %arg0, %arg1, %c0_i32 : i32, i32, i32
  }
}

</mosaic_0001>

<bundles_post_ra>
// kernel: tpu_custom_call.1
= control target key start
LH: loop header
LB: loop body
LE: loop exit
PB: predicated region body
PF: predicated region fallthrough
CT: control target
= control target key end

     0   :  { %s1504_s0 = inlined_call_operand.vmem [shape: f32[2,8,32], index: 0, kind: input, shape index: {}]   ;;  %s1505_s1 = inlined_call_operand.vmem [shape: f32[1,32], index: 1, kind: input, shape index: {}]   ;;  %s1506_s2 = inlined_call_operand.vmem [shape: f32[1,32], index: 2, kind: input, shape index: {}]   ;;  %s1507_s3 = inlined_call_operand.vmem [shape: f32[4,32,8], index: 3, kind: input, shape index: {}]   ;;  %s1508_s4 = inlined_call_operand.vmem [shape: f32[4,1,8], index: 4, kind: input, shape index: {}]   ;;  %s1509_s5 = inlined_call_operand.vmem [shape: f32[4,32,8], index: 5, kind: input, shape index: {}]   ;;  %s1510_s6 = inlined_call_operand.vmem [shape: f32[4,1,8], index: 6, kind: input, shape index: {}]   ;;  %s1511_s7 = inlined_call_operand.vmem [shape: f32[4,32,8], index: 7, kind: input, shape index: {}]   ;;  %s1512_s8 = inlined_call_operand.vmem [shape: f32[4,1,8], index: 8, kind: input, shape index: {}]   ;;  %s1513_s9 = inlined_call_operand.vmem [shape: f32[4,8,32], index: 9, kind: input, shape index: {}]   ;;  %s1514_s10 = inlined_call_operand.vmem [shape: f32[1,32], index: 10, kind: input, shape index: {}]   ;;  %s1515_s11 = inlined_call_operand.hbm [shape: f32[2,8,32], index: 11, kind: output, shape index: {}]  }
   0x1   :  { %1529 = sst [smem:[#allocation21_spill]] %s1504_s0 }
   0x2   :  { %1530 = sst [smem:[#allocation22_spill]] %s1507_s3 }
   0x3   :  { %1531 = sst [smem:[#allocation23_spill]] %s1515_s11 }
   0x4   :  { %16 = vsyncpa [#allocation8], 0 }
   0x5   :  { %18 = vsyncpa [#allocation8 + $0x1], 0  ;;  %s1271_s17 = smov 0   ;;  %s1273_s18 = smov 0  }
   0x6   :  { %s1275_s19 = smov 0   ;;  %s1277_s20 = smov 0  }
   0x7   :  { %s1279_s21 = smov 0   ;;  %s1281_s22 = smov 0  }
   0x8   :  { %s1283_s23 = smov 0   ;;  %s1285_s24 = smov 0  }
   0x9 LB: > { %1532 = sst [smem:[#allocation10_spill]] %s1178_s17  ;;  %s990_s25 = sadd.s32 4294967295, %s1206_s24   ;;  %s1206_s24 = sphi %s1285_s24, %s24_s24   ;;  %s1202_s23 = sphi %s1283_s23, %s1561_s23   ;;  %s1198_s22 = sphi %s1281_s22, %s1560_s22   ;;  %s1194_s21 = sphi %s1279_s21, %s1559_s21   ;;  %s1190_s20 = sphi %s1277_s20, %s1558_s20   ;;  %s1186_s19 = sphi %s1275_s19, %s1557_s19   ;;  %s1182_s18 = sphi %s1273_s18, %s1556_s18   ;;  %s1178_s17 = sphi %s1271_s17, %s1555_s17  }
   0xa   : > { %1533 = sst [smem:[#allocation11_spill]] %s1182_s18  ;;  %s991_s26 = sadd.s32 4294967294, %s1206_s24  }
   0xb   : > { %1534 = sst [smem:[#allocation12_spill]] %s1186_s19  ;;  %s36_s27 = sadd.s32 1, %s1198_s22 }
   0xc   : > { %1535 = sst [smem:[#allocation13_spill]] %s1198_s22  ;;  %p37_p0 = scmp.ge.s32.totalorder %s36_s27, 4 }
   0xd   : > { %1536 = sst [smem:[#allocation14_spill]] %s1202_s23  ;;  %s43_s28 = sadd.s32 1, %s1202_s23 }
   0xe   : > { %1537 = sst [smem:[#allocation15_spill]] %s1206_s24  ;;  %p333_p1 = scmp.ne.s32.totalorder %s1186_s19, %s1182_s18 }
   0xf   : > { %p334_p2 = scmp.eq.s32.totalorder %s990_s25, 7  ;;  %s1563_s27 = smov (%p37_p0, %s36_s27), 0 }
  0x10   : > { %1538 = sst [smem:[#allocation16_spill]] %s1563_s27  ;;  %s1565_s28 = smov (!%p37_p0, %s43_s28), %s1202_s23 }
  0x11   : > { %p1320_p3 = por %p334_p2, %p333_p1  ;;  %p339_p4 = scmp.ne.s32.totalorder %s1182_s18, %s1178_s17 }
  0x12   : > { %p45_p5 = scmp.ge.s32.totalorder %s1565_s28, 2  ;;  %p340_p6 = scmp.eq.s32.totalorder %s991_s26, 7 }
  0x13   : > { %s1539_s29 = scalar_select %p1320_p3, 1, 0 }
  0x14   : > { %p994_p7 = scmp.ge.s32.totalorder %s1206_s24, 1  ;;  %p423_p8 = scmp.lt.s32.totalorder %s1206_s24, 9 }
  0x15   : > { %1540 = sst [smem:[#allocation17_spill]] %s1539_s29  ;;  %s1567_s28 = smov (%p45_p5, %s1565_s28), 0 }
  0x16   : > { %1541 = sst [smem:[#allocation18_spill]] %s1567_s28  ;;  %p1330_p9 = por %p340_p6, %p339_p4 }
  0x17   : > { %p424_p10 = pnand %p994_p7, %p423_p8  ;;  %s318_s12 = ssub.s32 %s1202_s23, %s1567_s28 }
  0x18   : > { %s1542_s30 = scalar_select %p1330_p9, 1, 0 }
  0x19   : > { %s323_s13 = sadd.s32 1, %s1186_s19  ;;  %p321_p11 = scmp.eq.s32.totalorder %s318_s12, 0 }
  0x1a   : > { %1543 = sst [smem:[#allocation19_spill]] %s1542_s30  ;;  %427 = sbr.rel (%p424_p10) target bundleno = 1162 (0x48a), region = 64 }
  0x1b   : > { %s1338_s14 = scalar_select %p321_p11, %s1186_s19, %s323_s13  }
  0x1c   : > { %s1518_s15 = sand.u32 (!%p424_p10), 1, %s1182_s18   ;;  %p490_p12 = scmp.lt.s32.totalorder (!%p424_p10), %s1194_s21, 1 }
  0x1d   : > { %1544 = sst [smem:[#allocation20_spill]] %s1338_s14  ;;  %s1344_s16 = sshll.u32 (!%p424_p10), %s1518_s15, 3 }
  0x1e   : > { %p494_p13 = scmp.lt.s32.totalorder (!%p424_p10), %s1190_s20, 3  ;;  %p523_p0 = scmp.eq.s32.totalorder (!%p424_p10), %s1190_s20, 0 }
  0x1f   : > { %s491_s25 = scalar_select %p490_p12, %s1194_s21, 1 }
  0x20   : > { %s1350_s26 = scalar_select %p494_p13, %s1190_s20, 3 }
  0x21   : > { %s996_s12 = sshll.u32 %s491_s25, 3  ;;  %s1545_s0 = sld [smem:[#allocation21_spill]] }
  0x22   : > { %s1020_s23 = sshll.u32 %s1350_s26, 5  ;;  %s1546_s3 = sld [smem:[#allocation22_spill]] }
  0x23   : > { %s1370_s29 = scalar_lea.vmem %s1509_s5, %s1020_s23  ;;  %s509_s28 = scalar_lea.vmem %s1510_s6, %s1350_s26 }
  0x24   : > { %s1003_s19 = sshll.u32 %s1350_s26, 3  ;;  %s489_s24 = scalar_lea.vmem [#allocation7], %s1344_s16 }
  0x25   : > { %s1389_s11 = scalar_lea.vmem %s1513_s9, %s1003_s19  ;;  %p1004_p1 = scmp.ne.s32.totalorder %s1190_s20, 0 }
  0x27   : > { %s1355_s27 = scalar_lea.vmem %s1545_s0, %s996_s12  ;;  %s1379_s0 = scalar_lea.vmem %s1511_s7, %s1020_s23 }
  0x28   : > { %s1361_s14 = scalar_lea.vmem %s1546_s3, %s1020_s23  ;;  %s517_s3 = scalar_lea.vmem %s1512_s8, %s1350_s26 }
  0x29   : > { %526 = sbr.rel (%p1004_p1) target bundleno = 53 (0x35), region = 68 }
  0x2e   : > { %vm527_vm0 = vcmask 261120   ;;  %v529_v0 = vlaneseq  ;;  %v1208_v1 = vmov 0.0   ;;  %vm537_vm1 = vcmask 64512  }
  0x2f   : > { %528 = vst.msk [vmem:[#allocation6] sm:$0xff] %vm527_vm0, %v1208_v1  ;;  %v1209_v4 = vmov -1e+30  }
  0x30   : > { %v530_v2 = vshrl.u32 %v529_v0, 7  ;;  %v534_v3 = vand.u32 127, %v529_v0 }
  0x32   : > { %vm535_vm2 = vcmp.ge.s32.totalorder %v530_v2, %v534_v3 }
  0x33   : > { %v536_v5 = vsel %vm535_vm2, 0.0, %v1209_v4 }
  0x34   : > { %538 = vst.msk [vmem:[#allocation5] sm:$0xff] %vm537_vm1, %v536_v5 }
  0x35 PF: > { %543 = sbr.rel (!%p523_p0) target bundleno = 323 (0x143), region = 72  ;;  %v544_v6 = vld [vmem:[%s1355_s27] sm:$0xff] (%p523_p0)  ;;  %vm547_vm3 = vcmask (%p523_p0), 261120   ;;  %v1210_v8 = vmov (%p523_p0), 32.0  }
  0x36   : > { %v548_v7 = vsel (%p523_p0), %vm547_vm3, %v544_v6, 0.0  ;;  %1100 = vrcp.f32 (%p523_p0), %v1210_v8  ;;  %v1098_v29 = vld [vmem:[%s1505_s1] ss:$0 sm:$0xff] (%p523_p0) }
  0x37   : > { %549 = vadd.xlane.f32.xlu0 (%p523_p0), %v548_v7  ;;  %v1099_v31 = vld [vmem:[%s1506_s2] ss:$0 sm:$0xff] (%p523_p0) }
  0x3c   : > { %v1101_v9 = vpop.eup %1100 }
  0x3d   : > { %v552_v10 = vmul.f32 32.0, %v1101_v9  ;;  %vm556_vm4 = vweird.f32 %v1101_v9 }
  0x3f   : > { %v553_v11 = vsub.f32 1.0, %v552_v10 }
  0x41   : > { %v554_v12 = vmul.f32 %v1101_v9, %v553_v11 }
  0x43   : > { %v555_v13 = vadd.f32 %v1101_v9, %v554_v12 }
  0x45   : > { %v557_v14 = vsel %vm556_vm4, %v1101_v9, %v555_v13 }
  0xaa   : > { %v550_v15 = vpop.xlane.xlu0 %549 }
  0xab   : > { %v558_v16 = vmul.f32 %v557_v14, %v550_v15 }
  0xad   : > { %v559_v17 = vsub.f32 %v544_v6, %v558_v16 }
  0xaf   : > { %v560_v18 = vmul.f32 %v559_v17, %v559_v17 }
  0xb1   : > { %v561_v19 = vsel %vm547_vm3, %v560_v18, 0.0 }
  0xb2   : > { %562 = vadd.xlane.f32.xlu0 %v561_v19 }
 0x125   : > { %v563_v20 = vpop.xlane.xlu0 %562 }
 0x126   : > { %v564_v21 = vmul.f32 %v563_v20, %v557_v14 }
 0x128   : > { %v565_v22 = vadd.f32 1e-05, %v564_v21 }
 0x12a   : > { %1102 = vrsqrt.f32 %v565_v22  ;;  %vm572_vm6 = vweird.f32 %v565_v22 }
 0x130   : > { %v1103_v23 = vpop.eup %1102 }
 0x131   : > { %v567_v24 = vmul.f32 %v1103_v23, %v565_v22  ;;  %vm573_vm5 = vweird.f32 %v1103_v23 }
 0x132   : > { %vm574_vm7 = vmor %vm572_vm6, %vm573_vm5 }
 0x133   : > { %v568_v25 = vmul.f32 %v1103_v23, %v567_v24 }
 0x135   : > { %v569_v26 = vmul.f32 0.5, %v568_v25 }
 0x137   : > { %v570_v27 = vsub.f32 1.5, %v569_v26 }
 0x139   : > { %v571_v28 = vmul.f32 %v1103_v23, %v570_v27 }
 0x13b   : > { %v575_v30 = vsel %vm574_vm7, %v1103_v23, %v571_v28 }
 0x13c   : > { %v576_v32 = vmul.f32 %v575_v30, %v559_v17 }
 0x13e   : > { %v580_v33 = vmul.f32 %v1098_v29, %v576_v32 }
 0x140   : > { %v584_v34 = vadd.f32 %v1099_v31, %v580_v33 }
 0x142   : > { %585 = vst.msk [vmem:[#allocation2] sm:$0xff] %vm547_vm3, %v584_v34 }
 0x143 PF: > { %v593_v35 = vld [vmem:[%s1370_s29 + $0x18] sm:$0xff]  ;;  %v592_v36 = vld [vmem:[%s1370_s29 + $0x10] sm:$0xff]  ;;  %v591_v39 = vld [vmem:[%s1370_s29 + $0x8] sm:$0xff]  ;;  %vm598_vm8 = vcmask 261120   ;;  %vm624_vm9 = vcmask 64512   ;;  %s1547_s15 = scalar_lea.vmem %s1508_s4, %s1350_s26  ;;  %p1015_p2 = scmp.ne.s32.totalorder %s1190_s20, 3 }
 0x144   : > { %v661_v37 = vld [vmem:[%s1361_s14 + $0x18] sm:$0xff]  ;;  %614 = vmatpush.msra.mxu0 %v593_v35  ;;  %v660_v38 = vld [vmem:[%s1361_s14 + $0x10] sm:$0xff]  ;;  %v659_v40 = vld [vmem:[%s1361_s14 + $0x8] sm:$0xff] }
 0x145   : > { %682 = vmatpush.msra.mxu2 %v661_v37  ;;  %v590_v41 = vld [vmem:[%s1370_s29] sm:$0xff]  ;;  %s1007_s29 = sshll.u32 %s1190_s20, 3  ;;  %v629_v52 = vld [vmem:[%s1379_s0 + $0x18] sm:$0xff]  ;;  %v628_v53 = vld [vmem:[%s1379_s0 + $0x10] sm:$0xff] }
 0x146   : > { %615 = vmatpush.msra.mxu0 %v592_v36  ;;  %v658_v42 = vld [vmem:[%s1361_s14] sm:$0xff]  ;;  %s623_s19 = scalar_lea.vmem [#allocation3], %s1007_s29  ;;  %646 = vmatpush.msra.mxu1 %v629_v52  ;;  %v696_v54 = vld [vmem:[#allocation5] sm:$0xff]  ;;  %v771_v19 = vld [vmem:[#allocation6] sm:$0xff] }
 0x147   : > { %683 = vmatpush.msra.mxu2 %v660_v38  ;;  %v1104_v44 = vld [vmem:[%s509_s28] ss:$0 sm:$0xff]  ;;  %v627_v58 = vld [vmem:[%s1379_s0 + $0x8] sm:$0xff] }
 0x148   : > { %616 = vmatpush.msra.mxu0 %v591_v39  ;;  %v1105_v47 = vld [vmem:[%s1547_s15] ss:$0 sm:$0xff]  ;;  %647 = vmatpush.msra.mxu1 %v628_v53 }
 0x149   : > { %v589_v43 = vld [vmem:[#allocation2] sm:$0xff]  ;;  %684 = vmatpush.msra.mxu2 %v659_v40 }
 0x14a   : > { %617 = vmatpush.msra.mxu0 %v590_v41  ;;  %v626_v59 = vld [vmem:[%s1379_s0] sm:$0xff]  ;;  %648 = vmatpush.msra.mxu1 %v627_v58  ;;  %s654_s0 = scalar_lea.vmem [#allocation4], %s1007_s29 }
 0x14b   : > { %685 = vmatpush.msra.mxu2 %v658_v42  ;;  %1006 = vmatmul.msk.f32.vlgmr.msra.gmra.mxu0 %vm598_vm8, %v589_v43  ;;  %v1106_v1 = vld [vmem:[%s517_s3] ss:$0 sm:$0xff] }
 0x14c   : > { %1009 = vmatmul.msk.f32.vlgmr.msra.gmra.mxu2 %vm598_vm8, %v589_v43  ;;  %649 = vmatpush.msra.mxu1 %v626_v59  ;;  %v772_v5 = vld [vmem:[%s1389_s11] sm:$0xff] }
 0x14d   : > { %1008 = vmatmul.msk.f32.vlgmr.msra.gmra.mxu1 %vm598_vm8, %v589_v43  ;;  %791 = vmatpush.msrb.mxu0 %v772_v5 }
 0x1c8   : > { %v619_v45 = vpop.f32.mrf.mxu0 }
 0x1c9   : > { %v620_v46 = vadd.f32 %v1104_v44, %v619_v45 }
 0x1ca   : > { %v651_v2 = vpop.f32.mrf.mxu1 }
 0x1cb   : > { %625 = vst.msk [vmem:[%s623_s19] sm:$0xff] %vm624_vm9, %v620_v46  ;;  %v652_v3 = vadd.f32 %v1106_v1, %v651_v2 }
 0x1cd   : > { %655 = vst.msk [vmem:[%s654_s0] sm:$0xff] %vm624_vm9, %v652_v3 }
 0x1cf   : > { %v687_v48 = vpop.f32.mrf.mxu2 }
 0x1d0   : > { %v688_v49 = vadd.f32 %v1105_v47, %v687_v48 }
 0x1d2   : > { %v690_v50 = vmul.f32 0.35355338, %v688_v49  ;;  %v693_v51 = vld [vmem:[%s623_s19] sm:$0xff] }
 0x1d3   : > { %1011 = vmatpush.xpose.msk.msra.mxu3 %vm624_vm9, %v693_v51 }
 0x1d4   : > { %v695_v4 = vld [vmem:[%s654_s0] sm:$0xff] }
 0x1d6   : > { %1012 = vmatmul.msk.f32.vlgmr.msra.gmra.mxu3 %vm624_vm9, %v690_v50 }
 0x1d7   : > { %766 = vmatpush.msrb.mxu3 %v695_v4 }
 0x259   : > { %v721_v55 = vpop.f32.mrf.mxu3 }
 0x25a   : > { %v722_v56 = vadd.f32 %v721_v55, %v696_v54 }
 0x25c   : > { %v724_v57 = vsel %vm624_vm9, %v722_v56, -inf }
 0x25d   : > { %725 = vmax.xlane.f32.xlu0 %v724_v57 }
 0x2d0   : > { %v726_v60 = vpop.xlane.xlu0 %725 }
 0x2d1   : > { %v727_v61 = vsub.f32 %v722_v56, %v726_v60 }
 0x2d3   : > { %v728_v62 = vmul.f32 1.442695, %v727_v61 }
 0x2d5   : > { %1107 = vpow2.f32 %v728_v62 }
 0x2db   : > { %v1108_v63 = vpop.eup %1107 }
 0x2dc   : > { %v730_v0 = vsel %vm624_vm9, %v1108_v63, 0.0 }
 0x2dd   : > { %731 = vadd.xlane.f32.xlu0 %v730_v0 }
 0x350   : > { %v732_v6 = vpop.xlane.xlu0 %731 }
 0x351   : > { %1109 = vrcp.f32 %v732_v6  ;;  %v744_v10 = vand.u32 2147483648, %v732_v6  ;;  %v742_v12 = vand.u32 2147483647, %v732_v6  ;;  %vm738_vm11 = vweird.f32 %v732_v6 }
 0x353   : > { %v745_v14 = vor.u32 1.1754944e-38, %v744_v10  ;;  %vm743_vm13 = vcmp.eq.f32.partialorder %v742_v12, 8.507059e+37 }
 0x357   : > { %v1110_v7 = vpop.eup %1109 }
 0x358   : > { %v734_v8 = vmul.f32 %v1110_v7, %v732_v6  ;;  %vm739_vm10 = vweird.f32 %v1110_v7 }
 0x359   : > { %vm740_vm12 = vmor %vm738_vm11, %vm739_vm10 }
 0x35a   : > { %v735_v9 = vsub.f32 1.0, %v734_v8 }
 0x35c   : > { %v736_v11 = vmul.f32 %v1110_v7, %v735_v9 }
 0x35e   : > { %v737_v13 = vadd.f32 %v1110_v7, %v736_v11 }
 0x360   : > { %v741_v15 = vsel %vm740_vm12, %v1110_v7, %v737_v13 }
 0x361   : > { %v746_v16 = vsel %vm743_vm13, %v745_v14, %v741_v15 }
 0x362   : > { %v747_v17 = vmul.f32 %v1108_v63, %v746_v16 }
 0x364   : > { %1013 = vmatmul.msk.f32.vlgmr.msrb.gmra.mxu3 %vm624_vm9, %v747_v17 }
 0x3e7   : > { %v768_v18 = vpop.f32.mrf.mxu3 }
 0x3e8   : > { %1014 = vmatmul.msk.f32.vlgmr.msrb.gmra.mxu0 %vm624_vm9, %v768_v18 }
 0x464   : > { %801 = sbr.rel (%p1015_p2) target bundleno = 1141 (0x475), region = 80 }
 0x465   : > { %v793_v20 = vpop.f32.mrf.mxu0 }
 0x466   : > { %v796_v21 = vadd.f32 %v793_v20, %v771_v19 }
 0x468   : > { %797 = vst.msk [vmem:[#allocation6] sm:$0xff] %vm598_vm8, %v796_v21 }
 0x469   : > { %v803_v22 = vld [vmem:[%s1355_s27] sm:$0xff] }
 0x46a   : > { %v1111_v25 = vld [vmem:[%s1514_s10] ss:$0 sm:$0xff] }
 0x46f   : > { %v804_v23 = vld [vmem:[#allocation6] sm:$0xff] }
 0x470   : > { %v805_v24 = vadd.f32 %v804_v23, %v803_v22 }
 0x472   : > { %v810_v26 = vadd.f32 %v1111_v25, %v805_v24 }
 0x474   : > { %811 = vst.msk [vmem:[%s489_s24] sm:$0xff] %vm598_vm8, %v810_v26 }
 0x475 PF: > { %s1548_s11 = sld [smem:[#allocation11_spill]]  ;;  %s1017_s20 = sshll.u32 %s1194_s21, 3 }
 0x476   : > { %s1550_s25 = sld [smem:[#allocation23_spill]]  ;;  %s826_s12 = sshll.u32 %s489_s24, 4  ;;  %s827_s12 = int_to_ptr.vmem [resolvable:$true] %s826_s12 }
 0x47b   : > { %s1551_s29 = sand.u32 1, %s1548_s11  }
 0x47c   : > { %s824_s27 = scalar_lea.hbm %s1550_s25, %s1017_s20  ;;  %s813_s14 = scalar_lea.sflag [#allocation8], %s1551_s29 }
 0x47d   : > { %s828_s13 = sshll.u32 %s824_s27, 4  ;;  %s1132_s28 = scalar_lea.hbm %s1550_s25, 16  ;;  %s829_s13 = int_to_ptr.hbm [resolvable:$true] %s828_s13 }
 0x47e   : > { %s1126_s22 = sshra.s32 %s829_s13, 4  ;;  %s1127_s22 = int_to_ptr.hbm [resolvable:$true] %s1126_s22 }
 0x47f   : > { %s1128_s15 = scalar_lea.hbm %s1127_s22, 8  ;;  %p1133_p7 = scmp.lt.s32.totalorder %s1127_s22, %s1550_s25 }
 0x480   : > { %p1129_p4 = scmp.ne.s32.totalorder %s1127_s22, %s1128_s15  ;;  %p1134_p8 = scmp.lt.s32.totalorder %s1132_s28, %s1128_s15 }
 0x482   : > { %p1130_p5 = pnand %p1129_p4, %p1320_p3  ;;  %p1135_p10 = por %p1134_p8, %p1133_p7 }
 0x484   : > { %p1131_p6 = pneg %p1130_p5 }
 0x486   : > { %p1136_p11 = pnand %p1135_p10, %p1131_p6 }
 0x488   : > { %1139 = shalt.err (!%p1136_p11)
}
 0x489   : > { %1024 = dma.vmem_to_hbm [thread:$0]  (%p1320_p3), %s827_s12, 128, %s829_s13, %s813_s14  }
 0x48a PF: > { %s1552_s16 = sld [smem:[#allocation15_spill]] }
 0x48b   : > { %s1553_s24 = sld [smem:[#allocation10_spill]] }
 0x490   : > { %p1030_p12 = scmp.ge.s32.totalorder %s1552_s16, 2 }
 0x491   : > { %s840_s26 = sand.u32 1, %s1553_s24  }
 0x492   : > { %p1027_p13 = pnand %p1030_p12, %p1330_p9  ;;  %s841_s11 = scalar_lea.sflag [#allocation8], %s840_s26 }
 0x494   : > { %p1028_p0 = pneg %p1027_p13 }
 0x496   : > { %1173 = dma.done.wait (%p1028_p0), %s841_s11, 128  }
 0x497   : > { %1175 = vsyncadd (%p1028_p0), %s841_s11, 4294967168  ;;  %s24_s24 = sadd.s32 1, %s1552_s16   ;;  %s1555_s17 = sld [smem:[#allocation11_spill]] }
 0x498   : > { %p21_p1 = scmp.ge.s32.totalorder %s24_s24, 10   ;;  %s1556_s18 = sld [smem:[#allocation12_spill]] }
 0x499   : > { %s1557_s19 = sld [smem:[#allocation20_spill]] }
 0x49a   : > { %s1558_s20 = sld [smem:[#allocation13_spill]]  ;;  %23 = sbr.rel (!%p21_p1) target bundleno = 9 (0x9), region = 142 }
 0x49b   : > { %s1559_s21 = sld [smem:[#allocation14_spill]] }
 0x49c   : > { %s1560_s22 = sld [smem:[#allocation16_spill]] }
 0x49d   : > { %s1561_s23 = sld [smem:[#allocation18_spill]] }
 0x49f   :  { %847 = vsyncpa [#allocation8], 1 }
 0x4a0   :  { %849 = vsyncpa [#allocation8 + $0x1], 1 }

</bundles_post_ra>
